<compile_context>
chip_gen: v7x
topology: tpu7x:2x2x1
jax: 0.10.0
libtpu: 0.0.40
codegen_flags: <defaults>
</compile_context>

<pallas_src>
import jax
import jax.numpy as jnp
from jax.experimental import pallas as pl
from jax.experimental.pallas import tpu as pltpu

_LANE = 128
_SUBLANE = 8


def _round_up(v, m):
    return ((v + m - 1) // m) * m


def _pad2(arr, rows, cols):
    return jnp.pad(arr, ((0, rows - arr.shape[0]), (0, cols - arr.shape[1])))


# --------------------------- fused GIN forward kernel ------------------------
def _gin_fused_kernel(a_ref, x_ref, w1_ref, w2_ref, vec_ref, pool_ref,
                      hw1_ref, hvec_ref, hw2_ref, hb2_ref,
                      logp_ref, soft_ref, last_ref,
                      h_ref):
    l = pl.program_id(0)

    # Layer 0: seed the resident hidden state from the (padded) node features.
    @pl.when(l == 0)
    def _():
        h_ref[...] = x_ref[...]

    # Aggregation (1+eps)*x_i + sum_{j->i} x_j  ==  A_hat @ h   (eps = 0).
    # A_hat is stored bf16 (exact small-integer counts) and upcast to f32 so
    # the math matches the f32 reference.
    a = a_ref[...].astype(jnp.float32)
    h = jnp.dot(a, h_ref[...], preferred_element_type=jnp.float32)

    # Packed per-layer vectors: rows 0..3 = b1, b2, bn-scale, bn-shift.
    b1 = vec_ref[0:1, :]
    b2 = vec_ref[1:2, :]
    scale = vec_ref[2:3, :]
    shift = vec_ref[3:4, :]

    # GINConv nn: Linear -> ReLU -> Linear -> ReLU -> BatchNorm1d (eval, folded)
    h = jnp.maximum(
        jnp.dot(h, w1_ref[...], preferred_element_type=jnp.float32) + b1, 0.0)
    h = jnp.maximum(
        jnp.dot(h, w2_ref[...], preferred_element_type=jnp.float32) + b2, 0.0)
    h_new = h * scale + shift
    h_ref[...] = h_new

    # Head (global_mean_pool + MLP + log_softmax/softmax) fused on last step.
    @pl.when(l == pl.num_programs(0) - 1)
    def _():
        g = jnp.dot(pool_ref[...], h_new, preferred_element_type=jnp.float32)
        z = (jnp.dot(g, hw1_ref[...], preferred_element_type=jnp.float32)
             + hvec_ref[0:1, :])                                  # + b1
        z = jnp.maximum(z * hvec_ref[1:2, :] + hvec_ref[2:3, :], 0.0)  # BN, ReLU
        last = (jnp.dot(z, hw2_ref[...], preferred_element_type=jnp.float32)
                + hb2_ref[...])
        # Padded logit columns carry a -1e30 bias => softmax ignores them.
        m = jnp.max(last, axis=-1, keepdims=True)
        e = jnp.exp(last - m)
        s = jnp.sum(e, axis=-1, keepdims=True)
        logp = (last - m) - jnp.log(s)
        last_ref[...] = last
        logp_ref[...] = logp
        soft_ref[...] = jnp.exp(logp)   # softmax(log_softmax(z)) == softmax(z)


# ------------------------------- full forward --------------------------------
def gin_forward(x, edge_index, edge_weight, batch, params, num_graphs):
    del edge_weight  # unused by the reference forward (layer(x, edge_index))
    n, in_c = x.shape
    layers = params["layers"]
    mp = params["mlp1"]
    num_layers = len(layers)
    hidden = layers[0]["w2"].shape[1]
    out_c = mp["w2"].shape[1]

    n_pad = _round_up(n, _SUBLANE)
    g_pad = _round_up(num_graphs, _SUBLANE)
    cp = _round_up(max(in_c, hidden), _LANE)    # padded feature/hidden width
    op = _round_up(out_c, _LANE)                # padded output width

    # Dense aggregation matrix A_hat[dst, src] = #edges(src->dst) + I (eps=0).
    # Stored bf16: entries are small integer counts, exact in bf16.
    src, dst = edge_index[0], edge_index[1]
    a_hat = (jnp.zeros((n_pad, n_pad), jnp.float32).at[dst, src].add(1.0)
             + jnp.eye(n_pad, dtype=jnp.float32)).astype(jnp.bfloat16)

    x_p = _pad2(x, n_pad, cp)

    # Stack per-layer params along a leading layer axis (blocked by the grid).
    w1s = jnp.stack([_pad2(lp["w1"], cp, cp) for lp in layers])
    w2s = jnp.stack([_pad2(lp["w2"], cp, cp) for lp in layers])
    # Pack the four per-layer vectors into one (L, 4, cp) tensor.
    vecs = jnp.stack([
        jnp.concatenate([_pad2(lp["b1"], 1, cp), _pad2(lp["b2"], 1, cp),
                         _pad2(lp["scale"], 1, cp), _pad2(lp["shift"], 1, cp)],
                        axis=0)
        for lp in layers])

    # Mean-pool matrix P[g, i] = [batch[i] == g] / count_g, zero-padded.
    onehot = (batch[None, :] == jnp.arange(num_graphs)[:, None]).astype(jnp.float32)
    pool = onehot / jnp.maximum(onehot.sum(axis=1, keepdims=True), 1.0)
    pool_p = _pad2(pool, g_pad, n_pad)

    hw1 = _pad2(mp["w1"], cp, cp)
    # Head packed vectors: rows 0..2 = b1, bn-scale, bn-shift.
    hvec = jnp.concatenate([_pad2(mp["b1"], 1, cp), _pad2(mp["scale"], 1, cp),
                            _pad2(mp["shift"], 1, cp)], axis=0)
    hw2 = _pad2(mp["w2"], cp, op)
    # Padded logit columns get a very negative bias so softmax ignores them.
    hb2 = jnp.pad(mp["b2"], ((0, 0), (0, op - out_c)), constant_values=-1e30)

    def _fixed(shape):
        nd = len(shape)
        return pl.BlockSpec(shape, lambda l, _nd=nd: (0,) * _nd)

    def _per_layer(*tail):
        nt = len(tail)
        return pl.BlockSpec((None,) + tail, lambda l, _nt=nt: (l,) + (0,) * _nt)

    out_sds = jax.ShapeDtypeStruct((g_pad, op), jnp.float32)

    grid_spec = pltpu.PrefetchScalarGridSpec(
        num_scalar_prefetch=0,
        grid=(num_layers,),
        in_specs=[
            _fixed((n_pad, n_pad)),     # a_hat   (resident, bf16)
            _fixed((n_pad, cp)),        # x
            _per_layer(cp, cp),         # w1 stack
            _per_layer(cp, cp),         # w2 stack
            _per_layer(4, cp),          # packed [b1; b2; scale; shift] stack
            _fixed((g_pad, n_pad)),     # pool matrix
            _fixed((cp, cp)),           # head w1
            _fixed((3, cp)),            # head packed [b1; scale; shift]
            _fixed((cp, op)),           # head w2
            _fixed((1, op)),            # head b2 (-1e30 in padded columns)
        ],
        out_specs=(_fixed((g_pad, op)),) * 3,
        scratch_shapes=[pltpu.VMEM((n_pad, cp), jnp.float32)],   # resident h
    )

    logp_p, soft_p, last_p = pl.pallas_call(
        _gin_fused_kernel,
        out_shape=(out_sds, out_sds, out_sds),
        grid_spec=grid_spec,
        compiler_params=pltpu.CompilerParams(
            dimension_semantics=("arbitrary",),      # layer axis carries state
            vmem_limit_bytes=32 * 1024 * 1024),
    )(a_hat, x_p, w1s, w2s, vecs, pool_p, hw1, hvec, hw2, hb2)

    sl = (slice(0, num_graphs), slice(0, out_c))
    return logp_p[sl], soft_p[sl], last_p[sl]


gin_forward_jit = jax.jit(gin_forward, static_argnames=("num_graphs",))


# ------------------------------ pure-JAX reference ----------------------------
def reference_forward(x, edge_index, batch, params, num_graphs):
    n = x.shape[0]
    src, dst = edge_index[0], edge_index[1]
    a_hat = jnp.zeros((n, n), jnp.float32).at[dst, src].add(1.0) + jnp.eye(n)
    h = x
    for lp in params["layers"]:
        h = a_hat @ h
        h = jnp.maximum(h @ lp["w1"] + lp["b1"], 0.0)
        h = jnp.maximum(h @ lp["w2"] + lp["b2"], 0.0)
        h = h * lp["scale"] + lp["shift"]
    onehot = (batch[None, :] == jnp.arange(num_graphs)[:, None]).astype(jnp.float32)
    pool = onehot / jnp.maximum(onehot.sum(axis=1, keepdims=True), 1.0)
    g = pool @ h
    mp = params["mlp1"]
    m = jnp.maximum((g @ mp["w1"] + mp["b1"]) * mp["scale"] + mp["shift"], 0.0)
    last = m @ mp["w2"] + mp["b2"]
    return jax.nn.log_softmax(last, -1), jax.nn.softmax(last, -1), last


# ------------------------------ parameter init --------------------------------
def make_params(key, in_channels, hidden, out_channels, num_layers):
    def linear(k, fan_in, fan_out):
        kw, kb = jax.random.split(k)
        bound = 1.0 / (fan_in ** 0.5)
        w = jax.random.uniform(kw, (fan_in, fan_out), jnp.float32, -bound, bound)
        b = jax.random.uniform(kb, (1, fan_out), jnp.float32, -bound, bound)
        return w, b

    def bn(k, dim, eps=1e-5):
        kg, kb = jax.random.split(k)
        gamma = 1.0 + 0.1 * jax.random.normal(kg, (1, dim), jnp.float32)
        beta = 0.1 * jax.random.normal(kb, (1, dim), jnp.float32)
        run_mean = jnp.zeros((1, dim), jnp.float32)
        run_var = jnp.ones((1, dim), jnp.float32)
        scale = gamma / jnp.sqrt(run_var + eps)
        shift = beta - run_mean * scale
        return scale, shift

    keys = jax.random.split(key, num_layers + 1)
    layers = []
    for i in range(num_layers):
        k1, k2, k3 = jax.random.split(keys[i], 3)
        c_in = in_channels if i == 0 else hidden
        w1, b1 = linear(k1, c_in, hidden)
        w2, b2 = linear(k2, hidden, hidden)
        sc, sh = bn(k3, hidden)
        layers.append(dict(w1=w1, b1=b1, w2=w2, b2=b2, scale=sc, shift=sh))
    k1, k2, k3 = jax.random.split(keys[-1], 3)
    mw1, mb1 = linear(k1, hidden, hidden)
    msc, msh = bn(k2, hidden)
    mw2, mb2 = linear(k3, hidden, out_channels)
    return dict(layers=layers,
                mlp1=dict(w1=mw1, b1=mb1, scale=msc, shift=msh, w2=mw2, b2=mb2))


if __name__ == "__main__":
    N, IN_C, HIDDEN, OUT_C = 16, 4, 32, 8
    NUM_LAYERS, NUM_GRAPHS, E = 2, 2, 48

    key = jax.random.PRNGKey(0)
    kx, ke, kw, kp = jax.random.split(key, 4)

    x = jax.random.normal(kx, (N, IN_C), jnp.float32)
    edge_index = jax.random.randint(ke, (2, E), 0, N, jnp.int32)
    edge_weight = jax.random.uniform(kw, (E,), jnp.float32)  # unused (matches ref)
    batch = jnp.concatenate([jnp.zeros(N // 2, jnp.int32),
                             jnp.ones(N - N // 2, jnp.int32)])
    params = make_params(kp, IN_C, HIDDEN, OUT_C, NUM_LAYERS)

    logp, soft, last = gin_forward_jit(x, edge_index, edge_weight, batch,
                                       params, num_graphs=NUM_GRAPHS)
    jax.block_until_ready((logp, soft, last))

    ref_logp, ref_soft, ref_last = reference_forward(x, edge_index, batch,
                                                     params, NUM_GRAPHS)
    assert logp.shape == (NUM_GRAPHS, OUT_C)
    assert jnp.allclose(logp, ref_logp, atol=1e-4, rtol=1e-4)
    assert jnp.allclose(soft, ref_soft, atol=1e-5, rtol=1e-4)
    assert jnp.allclose(last, ref_last, atol=1e-4, rtol=1e-4)
    print("KERNEL_OK")
</pallas_src>

<mosaic_0001>
module attributes {stable_mosaic.version = 11 : i64} {
  func.func private @main(%arg0: i32) attributes {dimension_semantics = [#tpu.dimension_semantics<core_parallel>], iteration_bounds = array<i64: 2>, tpu.core_type = #tpu.core_type<sc_scalar_subcore>, window_params = []} {
    return
  }
}

module attributes {stable_mosaic.version = 11 : i64} {
  func.func private @main(%arg0: i32) attributes {dimension_semantics = [#tpu.dimension_semantics<core_parallel>], iteration_bounds = array<i64: 2>, tpu.core_type = #tpu.core_type<sc_scalar_subcore>, window_params = []} {
    return
  }
}

module attributes {stable_mosaic.version = 11 : i64} {
  func.func @_gin_fused_kernel(%arg0: i32, %arg1: memref<16x16xbf16, #tpu.memory_space<vmem>>, %arg2: memref<16x128xf32, #tpu.memory_space<vmem>>, %arg3: memref<1x128x128xf32, #tpu.memory_space<vmem>>, %arg4: memref<1x128x128xf32, #tpu.memory_space<vmem>>, %arg5: memref<1x4x128xf32, #tpu.memory_space<vmem>>, %arg6: memref<8x16xf32, #tpu.memory_space<vmem>>, %arg7: memref<128x128xf32, #tpu.memory_space<vmem>>, %arg8: memref<3x128xf32, #tpu.memory_space<vmem>>, %arg9: memref<128x128xf32, #tpu.memory_space<vmem>>, %arg10: memref<1x128xf32, #tpu.memory_space<vmem>>, %arg11: memref<8x128xf32, #tpu.memory_space<vmem>>, %arg12: memref<8x128xf32, #tpu.memory_space<vmem>>, %arg13: memref<8x128xf32, #tpu.memory_space<vmem>>, %arg14: memref<16x128xf32, #tpu.memory_space<vmem>>) attributes {dimension_semantics = [#tpu.dimension_semantics<arbitrary>], iteration_bounds = array<i64: 2>, scalar_prefetch = 0 : i64, scratch_operands = 1 : i64, tpu.core_type = #tpu.core_type<tc>, window_params = [{pipeline_mode = #tpu.pipeline_mode<synchronous>, transform_indices = @transform_0, window_bounds = array<i64: 16, 16>}, {pipeline_mode = #tpu.pipeline_mode<synchronous>, transform_indices = @transform_1, window_bounds = array<i64: 16, 128>}, {transform_indices = @transform_2, window_bounds = array<i64: 1, 128, 128>}, {transform_indices = @transform_3, window_bounds = array<i64: 1, 128, 128>}, {transform_indices = @transform_4, window_bounds = array<i64: 1, 4, 128>}, {pipeline_mode = #tpu.pipeline_mode<synchronous>, transform_indices = @transform_5, window_bounds = array<i64: 8, 16>}, {pipeline_mode = #tpu.pipeline_mode<synchronous>, transform_indices = @transform_6, window_bounds = array<i64: 128, 128>}, {pipeline_mode = #tpu.pipeline_mode<synchronous>, transform_indices = @transform_7, window_bounds = array<i64: 3, 128>}, {pipeline_mode = #tpu.pipeline_mode<synchronous>, transform_indices = @transform_8, window_bounds = array<i64: 128, 128>}, {pipeline_mode = #tpu.pipeline_mode<synchronous>, transform_indices = @transform_9, window_bounds = array<i64: 1, 128>}, {pipeline_mode = #tpu.pipeline_mode<synchronous>, transform_indices = @transform_10, window_bounds = array<i64: 8, 128>}, {pipeline_mode = #tpu.pipeline_mode<synchronous>, transform_indices = @transform_11, window_bounds = array<i64: 8, 128>}, {pipeline_mode = #tpu.pipeline_mode<synchronous>, transform_indices = @transform_12, window_bounds = array<i64: 8, 128>}]} {
    %c0_i32 = arith.constant 0 : i32
    %0 = arith.cmpi eq, %arg0, %c0_i32 : i32
    %1 = arith.extui %0 : i1 to i32
    %c0_i32_0 = arith.constant 0 : i32
    %2 = arith.cmpi ne, %1, %c0_i32_0 : i32
    scf.if %2 {
      %c0_26 = arith.constant 0 : index
      %c0_27 = arith.constant 0 : index
      %37 = vector.load %arg2[%c0_26, %c0_27] : memref<16x128xf32, #tpu.memory_space<vmem>>, vector<16x128xf32>
      %c0_28 = arith.constant 0 : index
      %c0_29 = arith.constant 0 : index
      %38 = vector.load %arg14[%c0_28, %c0_29] : memref<16x128xf32, #tpu.memory_space<vmem>>, vector<16x128xf32>
      tpu.vector_store %arg14[%c0_28, %c0_29], %37 {strides = array<i32>} : memref<16x128xf32, #tpu.memory_space<vmem>>, vector<16x128xf32>,
    } else {
    }
    %c0 = arith.constant 0 : index
    %c0_1 = arith.constant 0 : index
    %3 = vector.load %arg1[%c0, %c0_1] : memref<16x16xbf16, #tpu.memory_space<vmem>>, vector<16x16xbf16>
    %4 = arith.extf %3 : vector<16x16xbf16> to vector<16x16xf32>
    %c0_2 = arith.constant 0 : index
    %c0_3 = arith.constant 0 : index
    %5 = vector.load %arg14[%c0_2, %c0_3] : memref<16x128xf32, #tpu.memory_space<vmem>>, vector<16x128xf32>
    %cst = arith.constant dense<0.000000e+00> : vector<16x128xf32>
    %6 = tpu.matmul %4, %5, %cst {dimension_numbers = #tpu.dot_dimension_numbers<[1], [0], [0], [1], [0, 0, 1, 1], [], []>} : vector<16x16xf32>, vector<16x128xf32>, vector<16x128xf32> -> vector<16x128xf32>
    %c0_4 = arith.constant 0 : index
    %c0_5 = arith.constant 0 : index
    %c0_6 = arith.constant 0 : index
    %7 = vector.load %arg5[%c0_4, %c0_5, %c0_6] : memref<1x4x128xf32, #tpu.memory_space<vmem>>, vector<1x1x128xf32>
    %8 = vector.shape_cast %7 : vector<1x1x128xf32> to vector<1x128xf32>
    %c0_7 = arith.constant 0 : index
    %c1 = arith.constant 1 : index
    %c0_8 = arith.constant 0 : index
    %9 = vector.load %arg5[%c0_7, %c1, %c0_8] : memref<1x4x128xf32, #tpu.memory_space<vmem>>, vector<1x1x128xf32>
    %10 = vector.shape_cast %9 : vector<1x1x128xf32> to vector<1x128xf32>
    %c0_9 = arith.constant 0 : index
    %c2 = arith.constant 2 : index
    %c0_10 = arith.constant 0 : index
    %11 = vector.load %arg5[%c0_9, %c2, %c0_10] : memref<1x4x128xf32, #tpu.memory_space<vmem>>, vector<1x1x128xf32>
    %12 = vector.shape_cast %11 : vector<1x1x128xf32> to vector<1x128xf32>
    %c0_11 = arith.constant 0 : index
    %c3 = arith.constant 3 : index
    %c0_12 = arith.constant 0 : index
    %13 = vector.load %arg5[%c0_11, %c3, %c0_12] : memref<1x4x128xf32, #tpu.memory_space<vmem>>, vector<1x1x128xf32>
    %14 = vector.shape_cast %13 : vector<1x1x128xf32> to vector<1x128xf32>
    %c0_13 = arith.constant 0 : index
    %c0_14 = arith.constant 0 : index
    %c0_15 = arith.constant 0 : index
    %15 = vector.load %arg3[%c0_13, %c0_14, %c0_15] : memref<1x128x128xf32, #tpu.memory_space<vmem>>, vector<1x128x128xf32>
    %16 = vector.shape_cast %15 : vector<1x128x128xf32> to vector<128x128xf32>
    %cst_16 = arith.constant dense<0.000000e+00> : vector<16x128xf32>
    %17 = tpu.matmul %6, %16, %cst_16 {dimension_numbers = #tpu.dot_dimension_numbers<[1], [0], [0], [1], [0, 0, 1, 1], [], []>} : vector<16x128xf32>, vector<128x128xf32>, vector<16x128xf32> -> vector<16x128xf32>
    %18 = vector.broadcast %8 : vector<1x128xf32> to vector<16x128xf32>
    %19 = arith.addf %17, %18 : vector<16x128xf32>
    %cst_17 = arith.constant 0.000000e+00 : f32
    %20 = vector.broadcast %cst_17 : f32 to vector<16x128xf32>
    %21 = arith.maximumf %19, %20 : vector<16x128xf32>
    %c0_18 = arith.constant 0 : index
    %c0_19 = arith.constant 0 : index
    %c0_20 = arith.constant 0 : index
    %22 = vector.load %arg4[%c0_18, %c0_19, %c0_20] : memref<1x128x128xf32, #tpu.memory_space<vmem>>, vector<1x128x128xf32>
    %23 = vector.shape_cast %22 : vector<1x128x128xf32> to vector<128x128xf32>
    %cst_21 = arith.constant dense<0.000000e+00> : vector<16x128xf32>
    %24 = tpu.matmul %21, %23, %cst_21 {dimension_numbers = #tpu.dot_dimension_numbers<[1], [0], [0], [1], [0, 0, 1, 1], [], []>} : vector<16x128xf32>, vector<128x128xf32>, vector<16x128xf32> -> vector<16x128xf32>
    %25 = vector.broadcast %10 : vector<1x128xf32> to vector<16x128xf32>
    %26 = arith.addf %24, %25 : vector<16x128xf32>
    %cst_22 = arith.constant 0.000000e+00 : f32
    %27 = vector.broadcast %cst_22 : f32 to vector<16x128xf32>
    %28 = arith.maximumf %26, %27 : vector<16x128xf32>
    %29 = vector.broadcast %12 : vector<1x128xf32> to vector<16x128xf32>
    %30 = arith.mulf %28, %29 : vector<16x128xf32>
    %31 = vector.broadcast %14 : vector<1x128xf32> to vector<16x128xf32>
    %32 = arith.addf %30, %31 : vector<16x128xf32>
    %c0_23 = arith.constant 0 : index
    %c0_24 = arith.constant 0 : index
    %33 = vector.load %arg14[%c0_23, %c0_24] : memref<16x128xf32, #tpu.memory_space<vmem>>, vector<16x128xf32>
    tpu.vector_store %arg14[%c0_23, %c0_24], %32 {strides = array<i32>} : memref<16x128xf32, #tpu.memory_space<vmem>>, vector<16x128xf32>,
    %c1_i32 = arith.constant 1 : i32
    %34 = arith.cmpi eq, %arg0, %c1_i32 : i32
    %35 = arith.extui %34 : i1 to i32
    %c0_i32_25 = arith.constant 0 : i32
    %36 = arith.cmpi ne, %35, %c0_i32_25 : i32
    scf.if %36 {
      %c0_26 = arith.constant 0 : index
      %c0_27 = arith.constant 0 : index
      %37 = vector.load %arg6[%c0_26, %c0_27] : memref<8x16xf32, #tpu.memory_space<vmem>>, vector<8x16xf32>
      %cst_28 = arith.constant dense<0.000000e+00> : vector<8x128xf32>
      %38 = tpu.matmul %37, %32, %cst_28 {dimension_numbers = #tpu.dot_dimension_numbers<[1], [0], [0], [1], [0, 0, 1, 1], [], []>} : vector<8x16xf32>, vector<16x128xf32>, vector<8x128xf32> -> vector<8x128xf32>
      %c0_29 = arith.constant 0 : index
      %c0_30 = arith.constant 0 : index
      %39 = vector.load %arg7[%c0_29, %c0_30] : memref<128x128xf32, #tpu.memory_space<vmem>>, vector<128x128xf32>
      %cst_31 = arith.constant dense<0.000000e+00> : vector<8x128xf32>
      %40 = tpu.matmul %38, %39, %cst_31 {dimension_numbers = #tpu.dot_dimension_numbers<[1], [0], [0], [1], [0, 0, 1, 1], [], []>} : vector<8x128xf32>, vector<128x128xf32>, vector<8x128xf32> -> vector<8x128xf32>
      %c0_32 = arith.constant 0 : index
      %c0_33 = arith.constant 0 : index
      %41 = vector.load %arg8[%c0_32, %c0_33] : memref<3x128xf32, #tpu.memory_space<vmem>>, vector<1x128xf32>
      %42 = vector.broadcast %41 : vector<1x128xf32> to vector<8x128xf32>
      %43 = arith.addf %40, %42 : vector<8x128xf32>
      %c1_34 = arith.constant 1 : index
      %c0_35 = arith.constant 0 : index
      %44 = vector.load %arg8[%c1_34, %c0_35] : memref<3x128xf32, #tpu.memory_space<vmem>>, vector<1x128xf32>
      %45 = vector.broadcast %44 : vector<1x128xf32> to vector<8x128xf32>
      %46 = arith.mulf %43, %45 : vector<8x128xf32>
      %c2_36 = arith.constant 2 : index
      %c0_37 = arith.constant 0 : index
      %47 = vector.load %arg8[%c2_36, %c0_37] : memref<3x128xf32, #tpu.memory_space<vmem>>, vector<1x128xf32>
      %48 = vector.broadcast %47 : vector<1x128xf32> to vector<8x128xf32>
      %49 = arith.addf %46, %48 : vector<8x128xf32>
      %cst_38 = arith.constant 0.000000e+00 : f32
      %50 = vector.broadcast %cst_38 : f32 to vector<8x128xf32>
      %51 = arith.maximumf %49, %50 : vector<8x128xf32>
      %c0_39 = arith.constant 0 : index
      %c0_40 = arith.constant 0 : index
      %52 = vector.load %arg9[%c0_39, %c0_40] : memref<128x128xf32, #tpu.memory_space<vmem>>, vector<128x128xf32>
      %cst_41 = arith.constant dense<0.000000e+00> : vector<8x128xf32>
      %53 = tpu.matmul %51, %52, %cst_41 {dimension_numbers = #tpu.dot_dimension_numbers<[1], [0], [0], [1], [0, 0, 1, 1], [], []>} : vector<8x128xf32>, vector<128x128xf32>, vector<8x128xf32> -> vector<8x128xf32>
      %c0_42 = arith.constant 0 : index
      %c0_43 = arith.constant 0 : index
      %54 = vector.load %arg10[%c0_42, %c0_43] : memref<1x128xf32, #tpu.memory_space<vmem>>, vector<1x128xf32>
      %55 = vector.broadcast %54 : vector<1x128xf32> to vector<8x128xf32>
      %56 = arith.addf %53, %55 : vector<8x128xf32>
      %cst_44 = arith.constant dense<0xFF800000> : vector<8xf32>
      %57 = vector.multi_reduction <maximumf>, %56, %cst_44 [1] : vector<8x128xf32> to vector<8xf32>
      %58 = vector.shape_cast %57 : vector<8xf32> to vector<8x1xf32>
      %59 = vector.broadcast %58 : vector<8x1xf32> to vector<8x128xf32>
      %60 = arith.subf %56, %59 : vector<8x128xf32>
      %61 = math.exp %60 : vector<8x128xf32>
      %cst_45 = arith.constant dense<0.000000e+00> : vector<8xf32>
      %62 = vector.multi_reduction <add>, %61, %cst_45 [1] : vector<8x128xf32> to vector<8xf32>
      %63 = vector.shape_cast %62 : vector<8xf32> to vector<8x1xf32>
      %64 = vector.broadcast %58 : vector<8x1xf32> to vector<8x128xf32>
      %65 = arith.subf %56, %64 : vector<8x128xf32>
      %66 = math.log %63 : vector<8x1xf32>
      %67 = vector.broadcast %66 : vector<8x1xf32> to vector<8x128xf32>
      %68 = arith.subf %65, %67 : vector<8x128xf32>
      %c0_46 = arith.constant 0 : index
      %c0_47 = arith.constant 0 : index
      %69 = vector.load %arg13[%c0_46, %c0_47] : memref<8x128xf32, #tpu.memory_space<vmem>>, vector<8x128xf32>
      tpu.vector_store %arg13[%c0_46, %c0_47], %56 {strides = array<i32>} : memref<8x128xf32, #tpu.memory_space<vmem>>, vector<8x128xf32>,
      %c0_48 = arith.constant 0 : index
      %c0_49 = arith.constant 0 : index
      %70 = vector.load %arg11[%c0_48, %c0_49] : memref<8x128xf32, #tpu.memory_space<vmem>>, vector<8x128xf32>
      tpu.vector_store %arg11[%c0_48, %c0_49], %68 {strides = array<i32>} : memref<8x128xf32, #tpu.memory_space<vmem>>, vector<8x128xf32>,
      %71 = math.exp %68 : vector<8x128xf32>
      %c0_50 = arith.constant 0 : index
      %c0_51 = arith.constant 0 : index
      %72 = vector.load %arg12[%c0_50, %c0_51] : memref<8x128xf32, #tpu.memory_space<vmem>>, vector<8x128xf32>
      tpu.vector_store %arg12[%c0_50, %c0_51], %71 {strides = array<i32>} : memref<8x128xf32, #tpu.memory_space<vmem>>, vector<8x128xf32>,
    } else {
    }
    return
  }
  func.func @transform_0(%arg0: i32) -> (i32, i32) {
    %c0_i32 = arith.constant 0 : i32
    %c0_i32_0 = arith.constant 0 : i32
    %c0_i32_1 = arith.constant 0 : i32
    return %c0_i32, %c0_i32_0 : i32, i32
  }
  func.func @transform_1(%arg0: i32) -> (i32, i32) {
    %c0_i32 = arith.constant 0 : i32
    %c0_i32_0 = arith.constant 0 : i32
    %c0_i32_1 = arith.constant 0 : i32
    return %c0_i32, %c0_i32_0 : i32, i32
  }
  func.func @transform_2(%arg0: i32) -> (i32, i32, i32) {
    %c0_i32 = arith.constant 0 : i32
    %c0_i32_0 = arith.constant 0 : i32
    %c0_i32_1 = arith.constant 0 : i32
    return %arg0, %c0_i32, %c0_i32_0 : i32, i32, i32
  }
  func.func @transform_3(%arg0: i32) -> (i32, i32, i32) {
    %c0_i32 = arith.constant 0 : i32
    %c0_i32_0 = arith.constant 0 : i32
    %c0_i32_1 = arith.constant 0 : i32
    return %arg0, %c0_i32, %c0_i32_0 : i32, i32, i32
  }
  func.func @transform_4(%arg0: i32) -> (i32, i32, i32) {
    %c0_i32 = arith.constant 0 : i32
    %c0_i32_0 = arith.constant 0 : i32
    %c0_i32_1 = arith.constant 0 : i32
    return %arg0, %c0_i32, %c0_i32_0 : i32, i32, i32
  }
  func.func @transform_5(%arg0: i32) -> (i32, i32) {
    %c0_i32 = arith.constant 0 : i32
    %c0_i32_0 = arith.constant 0 : i32
    %c0_i32_1 = arith.constant 0 : i32
    return %c0_i32, %c0_i32_0 : i32, i32
  }
  func.func @transform_6(%arg0: i32) -> (i32, i32) {
    %c0_i32 = arith.constant 0 : i32
    %c0_i32_0 = arith.constant 0 : i32
    %c0_i32_1 = arith.constant 0 : i32
    return %c0_i32, %c0_i32_0 : i32, i32
  }
  func.func @transform_7(%arg0: i32) -> (i32, i32) {
    %c0_i32 = arith.constant 0 : i32
    %c0_i32_0 = arith.constant 0 : i32
    %c0_i32_1 = arith.constant 0 : i32
    return %c0_i32, %c0_i32_0 : i32, i32
  }
  func.func @transform_8(%arg0: i32) -> (i32, i32) {
    %c0_i32 = arith.constant 0 : i32
    %c0_i32_0 = arith.constant 0 : i32
    %c0_i32_1 = arith.constant 0 : i32
    return %c0_i32, %c0_i32_0 : i32, i32
  }
  func.func @transform_9(%arg0: i32) -> (i32, i32) {
    %c0_i32 = arith.constant 0 : i32
    %c0_i32_0 = arith.constant 0 : i32
    %c0_i32_1 = arith.constant 0 : i32
    return %c0_i32, %c0_i32_0 : i32, i32
  }
  func.func @transform_10(%arg0: i32) -> (i32, i32) {
    %c0_i32 = arith.constant 0 : i32
    %c0_i32_0 = arith.constant 0 : i32
    %c0_i32_1 = arith.constant 0 : i32
    return %c0_i32, %c0_i32_0 : i32, i32
  }
  func.func @transform_11(%arg0: i32) -> (i32, i32) {
    %c0_i32 = arith.constant 0 : i32
    %c0_i32_0 = arith.constant 0 : i32
    %c0_i32_1 = arith.constant 0 : i32
    return %c0_i32, %c0_i32_0 : i32, i32
  }
  func.func @transform_12(%arg0: i32) -> (i32, i32) {
    %c0_i32 = arith.constant 0 : i32
    %c0_i32_0 = arith.constant 0 : i32
    %c0_i32_1 = arith.constant 0 : i32
    return %c0_i32, %c0_i32_0 : i32, i32
  }
}

</mosaic_0001>

<bundles_post_ra>
// kernel: gin_forward.1
= control target key start
LH: loop header
LB: loop body
LE: loop exit
PB: predicated region body
PF: predicated region fallthrough
CT: control target
= control target key end

     0   :  { %s1566_s21 = smov 0   ;;  %s1786_s0 = inlined_call_operand.vmem [shape: bf16[16,16], index: 0, kind: input, shape index: {}]   ;;  %s1787_s1 = inlined_call_operand.vmem [shape: f32[16,128], index: 1, kind: input, shape index: {}]   ;;  %s1788_s2 = inlined_call_operand.vmem [shape: f32[2,128,128], index: 2, kind: input, shape index: {}]   ;;  %s1789_s3 = inlined_call_operand.vmem [shape: f32[2,128,128], index: 3, kind: input, shape index: {}]   ;;  %s1790_s4 = inlined_call_operand.vmem [shape: f32[2,4,128], index: 4, kind: input, shape index: {}]   ;;  %s1791_s5 = inlined_call_operand.vmem [shape: f32[8,16], index: 5, kind: input, shape index: {}]   ;;  %s1792_s6 = inlined_call_operand.vmem [shape: f32[128,128], index: 6, kind: input, shape index: {}]   ;;  %s1793_s7 = inlined_call_operand.vmem [shape: f32[3,128], index: 7, kind: input, shape index: {}]   ;;  %s1794_s8 = inlined_call_operand.vmem [shape: f32[128,128], index: 8, kind: input, shape index: {}]   ;;  %s1795_s9 = inlined_call_operand.vmem [shape: f32[1,128], index: 9, kind: input, shape index: {}]   ;;  %s1796_s10 = inlined_call_operand.vmem [shape: f32[8,128], index: 10, kind: output, shape index: {0}]   ;;  %s1797_s11 = inlined_call_operand.vmem [shape: f32[8,128], index: 11, kind: output, shape index: {1}]   ;;  %s1798_s12 = inlined_call_operand.vmem [shape: f32[8,128], index: 12, kind: output, shape index: {2}]  }
   0x1 LB: > { %s1572_s22 = sadd.s32 4294967295, %s1496_s21   ;;  %p1096_p0 = scmp.ge.s32.totalorder %s1496_s21, 1  ;;  %s1496_s21 = sphi %s1566_s21, %s23_s21  }
   0x2   : > { %p371_p1 = scmp.lt.s32.totalorder %s1496_s21, 3 }
   0x4   : > { %p372_p2 = pnand %p1096_p0, %p371_p1 }
   0x5   : > { %p417_p3 = scmp.lt.s32.totalorder (!%p372_p2), %s1572_s22, 1  ;;  %p1102_p4 = scmp.ne.s32.totalorder (!%p372_p2), %s1572_s22, 0 }
   0x6   : > { %375 = sbr.rel (%p372_p2) target bundleno = 1661 (0x67d), region = 60 }
   0xd   : > { %s418_s23 = scalar_select %p417_p3, %s1572_s22, 1 }
   0xe   : > { %434 = sbr.rel (%p1102_p4) target bundleno = 21 (0x15), region = 64  ;;  %v435_v0 = vld [vmem:[%s1787_s1] sm:$0xff] (!%p1102_p4)  ;;  %v436_v1 = vld [vmem:[%s1787_s1 + $0x8] sm:$0xff] (!%p1102_p4) }
   0xf   : > { %s1117_s24 = sshll.u32 %s418_s23, 7  ;;  %s1101_s25 = sshll.u32 %s418_s23, 2  ;;  %437 = vst [vmem:[#allocation2] sm:$0xff] (!%p1102_p4), %v435_v0  ;;  %438 = vst [vmem:[#allocation2 + $0x8] sm:$0xff] (!%p1102_p4), %v436_v1 }
  0x10   : > { %s1581_s28 = scalar_lea.vmem %s1788_s2, %s1117_s24  ;;  %s1586_s13 = scalar_lea.vmem %s1789_s3, %s1117_s24 }
  0x11   : > { %s1591_s16 = scalar_lea.vmem %s1790_s4, %s1101_s25 }
  0x15 PF: > { %v1120_v4 = vld [vmem:[%s1786_s0] sm:$0xff]   ;;  %vm445_vm0 = vcmask 130048   ;;  %v532_v8 = vld [vmem:[%s1581_s28 + $0x8] sm:$0xff]  ;;  %v533_v9 = vld [vmem:[%s1581_s28 + $0x10] sm:$0xff]  ;;  %p1109_p5 = scmp.ne.s32.totalorder %s1572_s22, 1 }
  0x16   : > { %v443_v2 = vld [vmem:[#allocation2] sm:$0xff]  ;;  %v444_v3 = vld [vmem:[#allocation2 + $0x8] sm:$0xff]  ;;  %v1121_v6 = vunpack.c.l.bf16 %v1120_v4  ;;  %v534_v11 = vld [vmem:[%s1581_s28 + $0x18] sm:$0xff]  ;;  %v1122_v12 = vunpack.c.h.bf16 %v1120_v4  ;;  %vm1499_vm1 = vmmov (!%p1109_p5), 0  }
  0x17   : > { %v1354_v5 = vpack.c.bf16 %v444_v3, %v443_v2  ;;  %v531_v7 = vld [vmem:[%s1581_s28] sm:$0xff]  ;;  %v1362_v13 = vpack.c.bf16 %v534_v11, %v533_v9  ;;  %v536_v15 = vld [vmem:[%s1581_s28 + $0x28] sm:$0xff]  ;;  %v537_v17 = vld [vmem:[%s1581_s28 + $0x30] sm:$0xff] }
  0x18   : > { %v1358_v10 = vpack.c.bf16 %v532_v8, %v531_v7  ;;  %1204 = vmatprep.mubr.msk.f32.mxu0 %vm445_vm0, %v1121_v6  ;;  %v535_v14 = vld [vmem:[%s1581_s28 + $0x20] sm:$0xff]  ;;  %v538_v18 = vld [vmem:[%s1581_s28 + $0x38] sm:$0xff]  ;;  %v540_v21 = vld [vmem:[%s1581_s28 + $0x48] sm:$0xff] }
  0x19   : > { %1355 = vmatprep.subr.bf16.mxu0 %v1354_v5  ;;  %v1366_v16 = vpack.c.bf16 %v536_v15, %v535_v14  ;;  %v1370_v19 = vpack.c.bf16 %v538_v18, %v537_v17  ;;  %v539_v20 = vld [vmem:[%s1581_s28 + $0x40] sm:$0xff]  ;;  %v541_v23 = vld [vmem:[%s1581_s28 + $0x50] sm:$0xff]  ;;  %v542_v24 = vld [vmem:[%s1581_s28 + $0x58] sm:$0xff]  ;;  %v1498_v17 = vmov (!%p1109_p5), 0.0|0.0   ;;  %v1500_v18 = vmov (!%p1109_p5), 0.0  }
  0x1a   : > { %1357 = vmatpush3.bf16.msra.mxu0 %v1354_v5  ;;  %1359 = vmatprep.subr.bf16.mxu1 %v1358_v10  ;;  %v1374_v22 = vpack.c.bf16 %v540_v21, %v539_v20  ;;  %v1378_v25 = vpack.c.bf16 %v542_v24, %v541_v23  ;;  %v543_v26 = vld [vmem:[%s1581_s28 + $0x60] sm:$0xff]  ;;  %v544_v27 = vld [vmem:[%s1581_s28 + $0x68] sm:$0xff]  ;;  %v545_v29 = vld [vmem:[%s1581_s28 + $0x70] sm:$0xff] }
  0x1b   : > { %1361 = vmatpush3.bf16.msra.mxu1 %v1358_v10  ;;  %v1382_v28 = vpack.c.bf16 %v544_v27, %v543_v26  ;;  %v546_v30 = vld [vmem:[%s1581_s28 + $0x78] sm:$0xff]  ;;  %v628_v32 = vld [vmem:[%s1586_s13] sm:$0xff]  ;;  %v629_v33 = vld [vmem:[%s1586_s13 + $0x8] sm:$0xff] }
  0x1c   : > { %1363 = vmatprep.subr.bf16.mxu1 %v1362_v13  ;;  %v1386_v31 = vpack.c.bf16 %v546_v30, %v545_v29  ;;  %v630_v34 = vld [vmem:[%s1586_s13 + $0x10] sm:$0xff]  ;;  %v1390_v35 = vpack.c.bf16 %v629_v33, %v628_v32  ;;  %v631_v36 = vld [vmem:[%s1586_s13 + $0x18] sm:$0xff]  ;;  %v632_v38 = vld [vmem:[%s1586_s13 + $0x20] sm:$0xff] }
  0x1d   : > { %1205 = vmatmul.mubr.msk.f32.vlgmr.msra.gmra.mrb[0].mxu0 %vm445_vm0, %v1122_v12  ;;  %v1394_v37 = vpack.c.bf16 %v631_v36, %v630_v34  ;;  %v633_v39 = vld [vmem:[%s1586_s13 + $0x28] sm:$0xff]  ;;  %v634_v41 = vld [vmem:[%s1586_s13 + $0x30] sm:$0xff]  ;;  %v635_v42 = vld [vmem:[%s1586_s13 + $0x38] sm:$0xff] }
  0x1e   : > { %1391 = vmatprep.subr.bf16.mxu0 %v1390_v35  ;;  %v1398_v40 = vpack.c.bf16 %v633_v39, %v632_v38  ;;  %v1402_v43 = vpack.c.bf16 %v635_v42, %v634_v41  ;;  %v636_v44 = vld [vmem:[%s1586_s13 + $0x40] sm:$0xff]  ;;  %v637_v45 = vld [vmem:[%s1586_s13 + $0x48] sm:$0xff]  ;;  %v638_v47 = vld [vmem:[%s1586_s13 + $0x50] sm:$0xff] }
  0x1f   : > { %1365 = vmatpush3.bf16.msra.mxu1 %v1362_v13  ;;  %1393 = vmatpush3.bf16.msra.mxu0 %v1390_v35  ;;  %v1406_v46 = vpack.c.bf16 %v637_v45, %v636_v44  ;;  %v639_v48 = vld [vmem:[%s1586_s13 + $0x58] sm:$0xff]  ;;  %v640_v50 = vld [vmem:[%s1586_s13 + $0x60] sm:$0xff]  ;;  %v641_v51 = vld [vmem:[%s1586_s13 + $0x68] sm:$0xff] }
  0x20   : > { %1367 = vmatprep.subr.bf16.mxu1 %v1366_v16  ;;  %1395 = vmatprep.subr.bf16.mxu0 %v1394_v37  ;;  %v1410_v49 = vpack.c.bf16 %v639_v48, %v638_v47  ;;  %v1414_v52 = vpack.c.bf16 %v641_v51, %v640_v50  ;;  %v642_v55 = vld [vmem:[%s1586_s13 + $0x70] sm:$0xff]  ;;  %v643_v56 = vld [vmem:[%s1586_s13 + $0x78] sm:$0xff]  ;;  %v1105_v58 = vld [vmem:[%s1591_s16] ss:$0 sm:$0xff] }
  0x21   : > { %v1418_v57 = vpack.c.bf16 %v643_v56, %v642_v55  ;;  %v1106_v1 = vld [vmem:[%s1591_s16 + $0x1] ss:$0 sm:$0xff]  ;;  %v1107_v5 = vld [vmem:[%s1591_s16 + $0x2] ss:$0 sm:$0xff]  ;;  %v1108_v8 = vld [vmem:[%s1591_s16 + $0x3] ss:$0 sm:$0xff] }
  0x22   : > { %v817_v15 = vld [vmem:[%s1792_s6] sm:$0xff] (!%p1109_p5)  ;;  %v819_v20 = vld [vmem:[%s1792_s6 + $0x10] sm:$0xff] (!%p1109_p5)  ;;  %v820_v21 = vld [vmem:[%s1792_s6 + $0x18] sm:$0xff] (!%p1109_p5) }
  0x23   : > { %1369 = vmatpush3.bf16.msra.mxu1 %v1366_v16  ;;  %1397 = vmatpush3.bf16.msra.mxu0 %v1394_v37  ;;  %v818_v16 = vld [vmem:[%s1792_s6 + $0x8] sm:$0xff] (!%p1109_p5)  ;;  %v1429_v23 = vpack.c.bf16 (!%p1109_p5), %v820_v21, %v819_v20  ;;  %v821_v24 = vld [vmem:[%s1792_s6 + $0x20] sm:$0xff] (!%p1109_p5)  ;;  %v823_v27 = vld [vmem:[%s1792_s6 + $0x30] sm:$0xff] (!%p1109_p5) }
  0x24   : > { %1371 = vmatprep.subr.bf16.mxu1 %v1370_v19  ;;  %1399 = vmatprep.subr.bf16.mxu0 %v1398_v40  ;;  %v825_v30 = vld [vmem:[%s1792_s6 + $0x40] sm:$0xff] (!%p1109_p5)  ;;  %v827_v33 = vld [vmem:[%s1792_s6 + $0x50] sm:$0xff] (!%p1109_p5)  ;;  %v828_v34 = vld [vmem:[%s1792_s6 + $0x58] sm:$0xff] (!%p1109_p5) }
  0x25   : > { %v1441_v35 = vpack.c.bf16 (!%p1109_p5), %v828_v34, %v827_v33  ;;  %v829_v36 = vld [vmem:[%s1792_s6 + $0x60] sm:$0xff] (!%p1109_p5)  ;;  %v830_v37 = vld [vmem:[%s1792_s6 + $0x68] sm:$0xff] (!%p1109_p5)  ;;  %v831_v39 = vld [vmem:[%s1792_s6 + $0x70] sm:$0xff] (!%p1109_p5) }
  0x26   : > { %v1444_v38 = vpack.c.bf16 (!%p1109_p5), %v830_v37, %v829_v36  ;;  %v921_v42 = vld [vmem:[%s1794_s8] sm:$0xff] (!%p1109_p5)  ;;  %v923_v44 = vld [vmem:[%s1794_s8 + $0x10] sm:$0xff] (!%p1109_p5)  ;;  %v930_v55 = vld [vmem:[%s1794_s8 + $0x48] sm:$0xff] (!%p1109_p5) }
  0x27   : > { %1373 = vmatpush3.bf16.msra.mxu1 %v1370_v19  ;;  %1401 = vmatpush3.bf16.msra.mxu0 %v1398_v40  ;;  %v1426_v19 = vpack.c.bf16 (!%p1109_p5), %v818_v16, %v817_v15  ;;  %v832_v40 = vld [vmem:[%s1792_s6 + $0x78] sm:$0xff] (!%p1109_p5)  ;;  %v925_v48 = vld [vmem:[%s1794_s8 + $0x20] sm:$0xff] (!%p1109_p5)  ;;  %v927_v51 = vld [vmem:[%s1794_s8 + $0x30] sm:$0xff] (!%p1109_p5) }
  0x28   : > { %1375 = vmatprep.subr.bf16.mxu1 %v1374_v22  ;;  %1403 = vmatprep.subr.bf16.mxu0 %v1402_v43  ;;  %v1447_v41 = vpack.c.bf16 (!%p1109_p5), %v832_v40, %v831_v39 }
  0x2b   : > { %1377 = vmatpush3.bf16.msra.mxu1 %v1374_v22  ;;  %1405 = vmatpush3.bf16.msra.mxu0 %v1402_v43  ;;  %v743_v22 = vld [vmem:[%s1791_s5] sm:$0xff] (!%p1109_p5)  ;;  %v922_v43 = vld [vmem:[%s1794_s8 + $0x8] sm:$0xff] (!%p1109_p5) }
  0x2c   : > { %1379 = vmatprep.subr.bf16.mxu1 %v1378_v25  ;;  %1407 = vmatprep.subr.bf16.mxu0 %v1406_v46  ;;  %v1450_v45 = vpack.c.bf16 (!%p1109_p5), %v922_v43, %v921_v42 }
  0x2f   : > { %1381 = vmatpush3.bf16.msra.mxu1 %v1378_v25  ;;  %1409 = vmatpush3.bf16.msra.mxu0 %v1406_v46  ;;  %v822_v25 = vld [vmem:[%s1792_s6 + $0x28] sm:$0xff] (!%p1109_p5)  ;;  %v924_v46 = vld [vmem:[%s1794_s8 + $0x18] sm:$0xff] (!%p1109_p5) }
  0x30   : > { %1383 = vmatprep.subr.bf16.mxu1 %v1382_v28  ;;  %1411 = vmatprep.subr.bf16.mxu0 %v1410_v49  ;;  %v1432_v26 = vpack.c.bf16 (!%p1109_p5), %v822_v25, %v821_v24  ;;  %v1453_v47 = vpack.c.bf16 (!%p1109_p5), %v924_v46, %v923_v44 }
  0x33   : > { %1385 = vmatpush3.bf16.msra.mxu1 %v1382_v28  ;;  %1413 = vmatpush3.bf16.msra.mxu0 %v1410_v49  ;;  %v824_v28 = vld [vmem:[%s1792_s6 + $0x38] sm:$0xff] (!%p1109_p5)  ;;  %v926_v49 = vld [vmem:[%s1794_s8 + $0x28] sm:$0xff] (!%p1109_p5) }
  0x34   : > { %1387 = vmatprep.subr.bf16.mxu1 %v1386_v31  ;;  %1415 = vmatprep.subr.bf16.mxu0 %v1414_v52  ;;  %v1435_v29 = vpack.c.bf16 (!%p1109_p5), %v824_v28, %v823_v27  ;;  %v1456_v50 = vpack.c.bf16 (!%p1109_p5), %v926_v49, %v925_v48 }
  0x37   : > { %1389 = vmatpush3.bf16.msra.mxu1 %v1386_v31  ;;  %1417 = vmatpush3.bf16.msra.mxu0 %v1414_v52  ;;  %v826_v31 = vld [vmem:[%s1792_s6 + $0x48] sm:$0xff] (!%p1109_p5)  ;;  %v928_v52 = vld [vmem:[%s1794_s8 + $0x38] sm:$0xff] (!%p1109_p5) }
  0x38   : > { %1419 = vmatprep.subr.bf16.mxu0 %v1418_v57  ;;  %1425 = vmatprep.subr.bf16.mxu1 (!%p1109_p5), %v1498_v17  ;;  %v1438_v32 = vpack.c.bf16 (!%p1109_p5), %v826_v31, %v825_v30 }
  0x3b   : > { %1421 = vmatpush3.bf16.msra.mxu0 %v1418_v57  ;;  %v931_v57 = vld [vmem:[%s1794_s8 + $0x50] sm:$0xff] (!%p1109_p5) }
  0x3c   : > { %1422 = vmatprep.subr.bf16.mxu0 (!%p1109_p5), %v1498_v17 }
  0xf0   : > { %v1206_v53 = vpop.f32.mrb[0].mxu0 }
  0xf1   : > { %v518_v54 = vpop.f32.mrb[1].mxu0 }
  0xf2   : > { %1239 = vmatprep.mubr.f32.mxu1 %v518_v54  ;;  %v929_v54 = vld [vmem:[%s1794_s8 + $0x40] sm:$0xff] (!%p1109_p5) }
  0xf3   : > { %1240 = vmatmul.mubr.f32.vlgmr.msra.gmra.mrb[0].mxu1 %v1206_v53  ;;  %v1459_v53 = vpack.c.bf16 (!%p1109_p5), %v928_v52, %v927_v51  ;;  %v1462_v56 = vpack.c.bf16 (!%p1109_p5), %v930_v55, %v929_v54 }
  0xf4   : > { %1427 = vmatpush3.bf16.msra.mxu1 (!%p1109_p5), %v1426_v19  ;;  %1316 = vmatprep.mubr.msk.f32.mxu1 (!%p1109_p5), %vm1499_vm1, %v1500_v18 }
  0xf5   : > { %1428 = vmatprep.subr.bf16.mxu1 (!%p1109_p5), %v1498_v17 }
  0xf8   : > { %1430 = vmatpush3.bf16.msra.mxu1 (!%p1109_p5), %v1429_v23 }
  0xf9   : > { %1431 = vmatprep.subr.bf16.mxu1 (!%p1109_p5), %v1498_v17 }
  0xfc   : > { %1433 = vmatpush3.bf16.msra.mxu1 (!%p1109_p5), %v1432_v26 }
  0xfd   : > { %1434 = vmatprep.subr.bf16.mxu1 (!%p1109_p5), %v1498_v17 }
 0x100   : > { %1436 = vmatpush3.bf16.msra.mxu1 (!%p1109_p5), %v1435_v29 }
 0x101   : > { %1437 = vmatprep.subr.bf16.mxu1 (!%p1109_p5), %v1498_v17 }
 0x104   : > { %1439 = vmatpush3.bf16.msra.mxu1 (!%p1109_p5), %v1438_v32 }
 0x105   : > { %1440 = vmatprep.subr.bf16.mxu1 (!%p1109_p5), %v1498_v17 }
 0x108   : > { %1442 = vmatpush3.bf16.msra.mxu1 (!%p1109_p5), %v1441_v35 }
 0x109   : > { %1443 = vmatprep.subr.bf16.mxu1 (!%p1109_p5), %v1498_v17 }
 0x10c   : > { %1445 = vmatpush3.bf16.msra.mxu1 (!%p1109_p5), %v1444_v38 }
 0x10d   : > { %1446 = vmatprep.subr.bf16.mxu1 (!%p1109_p5), %v1498_v17 }
 0x110   : > { %1448 = vmatpush3.bf16.msra.mxu1 (!%p1109_p5), %v1447_v41 }
 0x1c6   : > { %v1241_v59 = vpop.f32.mrb[0].mxu1 }
 0x1c7   : > { %v623_v60 = vadd.f32 %v1241_v59, %v1105_v58  ;;  %v617_v61 = vpop.f32.mrb[1].mxu1 }
 0x1c8   : > { %v618_v62 = vadd.f32 %v1105_v58, %v617_v61  ;;  %v932_v58 = vld [vmem:[%s1794_s8 + $0x58] sm:$0xff] (!%p1109_p5) }
 0x1c9   : > { %v627_v0 = vmax.f32 %v623_v60, 0.0  ;;  %v1465_v59 = vpack.c.bf16 (!%p1109_p5), %v932_v58, %v931_v57 }
 0x1ca   : > { %v626_v63 = vmax.f32 %v618_v62, 0.0  ;;  %v933_v62 = vld [vmem:[%s1794_s8 + $0x60] sm:$0xff] (!%p1109_p5) }
 0x1cc   : > { %1274 = vmatprep.mubr.f32.mxu0 %v626_v63  ;;  %v934_v63 = vld [vmem:[%s1794_s8 + $0x68] sm:$0xff] (!%p1109_p5) }
 0x1cd   : > { %1275 = vmatmul.mubr.f32.vlgmr.msra.gmra.mrb[2].mxu0 %v627_v0  ;;  %v1468_v0 = vpack.c.bf16 (!%p1109_p5), %v934_v63, %v933_v62 }
 0x1ce   : > { %1281 = vmatprep.mubr.msk.f32.mxu0 (!%p1109_p5), %vm1499_vm1, %v1500_v18 }
 0x2a0   : > { %v1276_v2 = vpop.f32.mrb[2].mxu0 }
 0x2a1   : > { %v720_v3 = vadd.f32 %v1276_v2, %v1106_v1  ;;  %v714_v4 = vpop.f32.mrb[3].mxu0  ;;  %v936_v2 = vld [vmem:[%s1794_s8 + $0x78] sm:$0xff] (!%p1109_p5) }
 0x2a2   : > { %v715_v6 = vadd.f32 %v1106_v1, %v714_v4  ;;  %v935_v1 = vld [vmem:[%s1794_s8 + $0x70] sm:$0xff] (!%p1109_p5)  ;;  %v1111_v4 = vld [vmem:[%s1793_s7] ss:$0 sm:$0xff] (!%p1109_p5) }
 0x2a3   : > { %v724_v7 = vmax.f32 %v720_v3, 0.0  ;;  %v1471_v3 = vpack.c.bf16 (!%p1109_p5), %v936_v2, %v935_v1 }
 0x2a4   : > { %v723_v9 = vmax.f32 %v715_v6, 0.0  ;;  %742 = sbr.rel (%p1109_p5) target bundleno = 1661 (0x67d), region = 68  ;;  %v1112_v6 = vld [vmem:[%s1793_s7 + $0x1] ss:$0 sm:$0xff] (!%p1109_p5) }
 0x2a5   : > { %v730_v10 = vmul.f32 %v1107_v5, %v724_v7 }
 0x2a6   : > { %v729_v11 = vmul.f32 %v1107_v5, %v723_v9  ;;  %v1113_v9 = vld [vmem:[%s1793_s7 + $0x2] ss:$0 sm:$0xff] (!%p1109_p5) }
 0x2a7   : > { %v736_v12 = vadd.f32 %v1108_v8, %v730_v10 }
 0x2a8   : > { %v735_v13 = vadd.f32 %v1108_v8, %v729_v11 }
 0x2a9   : > { %738 = vst [vmem:[#allocation2 + $0x8] sm:$0xff] %v736_v12 }
 0x2aa   : > { %737 = vst [vmem:[#allocation2] sm:$0xff] %v735_v13  ;;  %v1423_v14 = vpack.c.bf16 (!%p1109_p5), %v736_v12, %v735_v13  ;;  %v1114_v13 = vld [vmem:[%s1795_s9] ss:$0 sm:$0xff] (!%p1109_p5) }
 0x2ac   : > { %1424 = vmatpush3.bf16.msra.mxu0 %v1423_v14 }
 0x2ad   : > { %1449 = vmatprep.subr.bf16.mxu0 %v1498_v17 }
 0x2af   : > { %1282 = vmatmul.mubr.msk.f32.vlgmr.msra.gmra.mrb[0].mxu0 %vm445_vm0, %v743_v22 }
 0x2b0   : > { %1351 = vmatprep.mubr.msk.f32.mxu0 %vm1499_vm1, %v1500_v18  ;;  %1451 = vmatpush3.bf16.msra.mxu0 %v1450_v45 }
 0x2b1   : > { %1452 = vmatprep.subr.bf16.mxu0 %v1498_v17 }
 0x2b4   : > { %1454 = vmatpush3.bf16.msra.mxu0 %v1453_v47 }
 0x2b5   : > { %1455 = vmatprep.subr.bf16.mxu0 %v1498_v17 }
 0x2b8   : > { %1457 = vmatpush3.bf16.msra.mxu0 %v1456_v50 }
 0x2b9   : > { %1458 = vmatprep.subr.bf16.mxu0 %v1498_v17 }
 0x2bc   : > { %1460 = vmatpush3.bf16.msra.mxu0 %v1459_v53 }
 0x2bd   : > { %1461 = vmatprep.subr.bf16.mxu0 %v1498_v17 }
 0x2c0   : > { %1463 = vmatpush3.bf16.msra.mxu0 %v1462_v56 }
 0x2c1   : > { %1464 = vmatprep.subr.bf16.mxu0 %v1498_v17 }
 0x2c4   : > { %1466 = vmatpush3.bf16.msra.mxu0 %v1465_v59 }
 0x2c5   : > { %1467 = vmatprep.subr.bf16.mxu0 %v1498_v17 }
 0x2c8   : > { %1469 = vmatpush3.bf16.msra.mxu0 %v1468_v0 }
 0x2c9   : > { %1470 = vmatprep.subr.bf16.mxu0 %v1498_v17 }
 0x2cc   : > { %1472 = vmatpush3.bf16.msra.mxu0 %v1471_v3 }
 0x382   : > { %v813_v60 = vpop.f32.mrb[0].mxu0 }
 0x383   : > { %v1283_v61 = vpop.f32.mrb[1].mxu0  ;;  %1317 = vmatmul.mubr.f32.vlgmr.msra.gmra.mrb[0].mxu1 %v813_v60 }
 0x456   : > { %v904_v5 = vpop.f32.mrb[0].mxu1 }
 0x457   : > { %v905_v7 = vadd.f32 %v1111_v4, %v904_v5  ;;  %v1318_v8 = vpop.f32.mrb[1].mxu1 }
 0x459   : > { %v913_v10 = vmul.f32 %v1112_v6, %v905_v7 }
 0x45b   : > { %v919_v11 = vadd.f32 %v1113_v9, %v913_v10 }
 0x45d   : > { %v920_v12 = vmax.f32 %v919_v11, 0.0 }
 0x45f   : > { %1352 = vmatmul.mubr.f32.vlgmr.msra.gmra.mrb[2].mxu0 %v920_v12 }
 0x532   : > { %v1010_v14 = vpop.f32.mrb[2].mxu0 }
 0x533   : > { %v1011_v15 = vadd.f32 %v1114_v13, %v1010_v14  ;;  %v1353_v16 = vpop.f32.mrb[3].mxu0 }
 0x535   : > { %1024 = vst [vmem:[%s1798_s12] sm:$0xff] %v1011_v15  ;;  %1014 = vmax.xlane.f32.xlu0 %v1011_v15 }
 0x5c2   : > { %v1015_v17 = vpop.xlane.xlu0 %1014 }
 0x5c3   : > { %v1016_v18 = vsub.f32 %v1011_v15, %v1015_v17 }
 0x5c5   : > { %v1017_v19 = vmul.f32 1.442695, %v1016_v18 }
 0x5c7   : > { %1484 = vpow2.f32 %v1017_v19 }
 0x5d1   : > { %v1485_v20 = vpop.eup %1484 }
 0x5d2   : > { %1019 = vadd.xlane.f32.xlu0 %v1485_v20 }
 0x65f   : > { %v1020_v21 = vpop.xlane.xlu0 %1019 }
 0x660   : > { %1486 = vlog2.f32 %v1020_v21 }
 0x66a   : > { %v1487_v22 = vpop.eup %1486 }
 0x66b   : > { %v1022_v23 = vmul.f32 0.6931472, %v1487_v22 }
 0x66d   : > { %v1023_v24 = vsub.f32 %v1016_v18, %v1022_v23 }
 0x66f   : > { %1025 = vst [vmem:[%s1796_s10] sm:$0xff] %v1023_v24  ;;  %v1026_v25 = vmul.f32 1.442695, %v1023_v24 }
 0x671   : > { %1488 = vpow2.f32 %v1026_v25 }
 0x67b   : > { %v1489_v26 = vpop.eup %1488 }
 0x67c   : > { %1028 = vst [vmem:[%s1797_s11] sm:$0xff] %v1489_v26 }
 0x67d PF: > { %s23_s21 = sadd.s32 1, %s1496_s21  }
 0x67e   : > { %p20_p6 = scmp.ge.s32.totalorder %s23_s21, 4  }
 0x680   :  { %22 = sbr.rel (!%p20_p6) target bundleno = 1 (0x1), region = 116 }

</bundles_post_ra>
